<compile_context>
chip_gen: v6e
topology: v6e:2x2x1
jax: 0.10.0
libtpu: 0.0.40
codegen_flags: <defaults>
</compile_context>

<pallas_src>
import math
import functools

import jax
import jax.numpy as jnp
from jax.experimental import pallas as pl
from jax.experimental.pallas import tpu as pltpu


def _round_up(x, m):
    return ((x + m - 1) // m) * m


# ---------------------------------------------------------------------------
# Kernels
# ---------------------------------------------------------------------------

def _equal_linear_kernel_single_k(x_ref, w_ref, b_ref, o_ref, *,
                                  scale_eff, use_act):
    """Single-K-step path: no accumulator scratch, result written directly.

    x_ref: (tm, tk)  activation tile (native dtype or bf16, fed to the MXU)
    w_ref: (tk, tn)  pre-transposed weight tile -> plain NN matmul
    b_ref: (1,  tn)  pre-folded f32 bias: bias*lr_mul  (or *lr_mul*sqrt2)
    o_ref: (tm, tn)  output tile (lane-dense, tn % 128 == 0)
    """
    h = jnp.dot(x_ref[...], w_ref[...], preferred_element_type=jnp.float32)
    h = h * scale_eff + b_ref[...]
    if use_act:
        # sqrt(2) already folded into scale_eff / b_ref (lrelu is pos.-homog.)
        h = jnp.where(h >= 0, h, 0.2 * h)
    o_ref[...] = h.astype(o_ref.dtype)


def _equal_linear_kernel_multi_k(x_ref, w_ref, b_ref, o_ref, acc_ref, *,
                                 scale_eff, use_act):
    """K-tiled path with a persistent f32 VMEM accumulator (K innermost)."""
    k = pl.program_id(2)

    @pl.when(k == 0)
    def _():
        acc_ref[...] = jnp.zeros_like(acc_ref)

    acc_ref[...] += jnp.dot(x_ref[...], w_ref[...],
                            preferred_element_type=jnp.float32)

    @pl.when(k == pl.num_programs(2) - 1)
    def _():
        h = acc_ref[...] * scale_eff + b_ref[...]
        if use_act:
            h = jnp.where(h >= 0, h, 0.2 * h)
        o_ref[...] = h.astype(o_ref.dtype)


# ---------------------------------------------------------------------------
# One-time parameter preparation (hoisted out of the per-call path)
# ---------------------------------------------------------------------------

def prepare_equal_linear_params(weight, bias, *, lr_mul=1.0, activation=None,
                                param_dtype=None, tk_max=2048):
    """Transpose W to (in_dim, out_dim), zero-pad to tile multiples, optionally
    cast to bf16, and fold lr_mul / sqrt(2) into the bias and a scalar scale.
    Call once at layer construction; reuse the result for every forward."""
    out_dim, in_dim = weight.shape
    assert bias is not None and bias.shape == (out_dim,)

    scale = (1.0 / math.sqrt(in_dim)) * lr_mul
    if activation is not None:
        # leaky_relu(z, 0.2)*sqrt2 == leaky_relu(z*sqrt2, 0.2)
        scale_eff = scale * math.sqrt(2.0)
        bias_eff = bias.astype(jnp.float32) * (lr_mul * math.sqrt(2.0))
    else:
        scale_eff = scale
        bias_eff = bias.astype(jnp.float32) * lr_mul

    # N tile: 256-aligned when the padded out_dim allows (v6e/v7x 2x256 MXU,
    # and N-extent >= 2 for out_dim >= 512 feeds both v7x TensorCores),
    # else 128 (still lane-dense, unmasked stores).
    np_ = _round_up(out_dim, 128)
    tn = 256 if np_ % 256 == 0 else 128

    # K tile: largest 128-multiple divisor of the padded in_dim that fits
    # tk_max, so typical in_dims (<= 2048) use a single K step (no accumulator)
    # and larger ones split evenly without extra padding.
    kp = _round_up(in_dim, 128)
    tk = 128
    n_k = 1
    while n_k <= kp // 128:
        cand = kp // n_k
        if kp % n_k == 0 and cand % 128 == 0 and cand <= tk_max:
            tk = cand
            break
        n_k += 1

    w_t = weight.T                                   # (in_dim, out_dim)
    if param_dtype is not None:
        w_t = w_t.astype(param_dtype)                # e.g. bf16 MXU feed
    if (kp, np_) != (in_dim, out_dim):
        w_t = jnp.pad(w_t, ((0, kp - in_dim), (0, np_ - out_dim)))
    b2d = bias_eff.reshape(1, out_dim)
    if np_ != out_dim:
        b2d = jnp.pad(b2d, ((0, 0), (0, np_ - out_dim)))

    return dict(w_t=w_t, b2d=b2d, scale_eff=scale_eff,
                use_act=activation is not None,
                in_dim=in_dim, out_dim=out_dim, tn=tn, tk=tk)


# ---------------------------------------------------------------------------
# Per-call forward
# ---------------------------------------------------------------------------

def equal_linear_apply(x, params, *, tm_max=512,
                       vmem_limit_bytes=48 * 1024 * 1024):
    """EqualLinear forward on prepared parameters. x: (batch, in_dim)."""
    batch, in_dim = x.shape
    assert in_dim == params["in_dim"]
    w_t, b2d = params["w_t"], params["b2d"]
    kp, np_ = w_t.shape
    tn, tk = params["tn"], params["tk"]
    out_dim = params["out_dim"]
    out_dtype = x.dtype

    tm = min(tm_max, _round_up(batch, 8))
    mp = _round_up(batch, tm)

    if x.dtype != w_t.dtype:
        x = x.astype(w_t.dtype)                      # match MXU feed dtype
    if (mp, kp) != (batch, in_dim):
        # K padding contributes 0 to the dot; padded M rows are sliced away.
        x = jnp.pad(x, ((0, mp - batch), (0, kp - in_dim)))

    grid_m, grid_n, grid_k = mp // tm, np_ // tn, kp // tk

    if grid_k == 1:
        kernel = functools.partial(_equal_linear_kernel_single_k,
                                   scale_eff=params["scale_eff"],
                                   use_act=params["use_act"])
        grid_spec = pltpu.PrefetchScalarGridSpec(
            num_scalar_prefetch=0,
            grid=(grid_m, grid_n),
            in_specs=[
                pl.BlockSpec((tm, tk), lambda i, j: (i, 0)),   # x tile
                pl.BlockSpec((tk, tn), lambda i, j: (0, j)),   # W.T tile (NN)
                pl.BlockSpec((1, tn), lambda i, j: (0, j)),    # folded bias
            ],
            out_specs=pl.BlockSpec((tm, tn), lambda i, j: (i, j)),
        )
        dim_sem = ("parallel", "parallel")
    else:
        kernel = functools.partial(_equal_linear_kernel_multi_k,
                                   scale_eff=params["scale_eff"],
                                   use_act=params["use_act"])
        grid_spec = pltpu.PrefetchScalarGridSpec(
            num_scalar_prefetch=0,
            grid=(grid_m, grid_n, grid_k),
            in_specs=[
                pl.BlockSpec((tm, tk), lambda i, j, k: (i, k)),
                pl.BlockSpec((tk, tn), lambda i, j, k: (k, j)),
                pl.BlockSpec((1, tn), lambda i, j, k: (0, j)),
            ],
            out_specs=pl.BlockSpec((tm, tn), lambda i, j, k: (i, j)),
            scratch_shapes=[pltpu.VMEM((tm, tn), jnp.float32)],
        )
        dim_sem = ("parallel", "parallel", "arbitrary")

    out = pl.pallas_call(
        kernel,
        out_shape=jax.ShapeDtypeStruct((mp, np_), out_dtype),
        grid_spec=grid_spec,
        compiler_params=pltpu.CompilerParams(
            dimension_semantics=dim_sem,
            vmem_limit_bytes=vmem_limit_bytes,
        ),
    )(x, w_t, b2d)

    if (mp, np_) != (batch, out_dim):
        out = out[:batch, :out_dim]
    return out


def equal_linear(x, weight, bias, *, lr_mul=1.0, activation=None,
                 param_dtype=None, tk_max=2048, tm_max=512):
    """Convenience wrapper (prep + apply). In a real model, call
    prepare_equal_linear_params once at init and reuse it per forward."""
    params = prepare_equal_linear_params(
        weight, bias, lr_mul=lr_mul, activation=activation,
        param_dtype=param_dtype, tk_max=tk_max)
    return equal_linear_apply(x, params, tm_max=tm_max)


def equal_linear_ref(x, weight, bias, *, lr_mul=1.0, activation=None):
    """Pure-JAX reference mirroring the PyTorch forward."""
    in_dim = weight.shape[1]
    scale = (1.0 / math.sqrt(in_dim)) * lr_mul
    h = x @ (weight * scale).T + bias * lr_mul
    if activation is not None:
        h = jnp.where(h >= 0, h, 0.2 * h) * math.sqrt(2.0)
    return h


if __name__ == "__main__":
    key = jax.random.PRNGKey(0)
    k1, k2, k3, k4, k5, k6, k7, k8 = jax.random.split(key, 8)

    # --- 1) Small StyleGAN2 mapping-style layer, f32, single-K path ---------
    batch, in_dim, out_dim = 8, 32, 64
    lr_mul = 0.01
    x = jax.random.normal(k1, (batch, in_dim), dtype=jnp.float32)
    weight = jax.random.normal(k2, (out_dim, in_dim), dtype=jnp.float32) / lr_mul
    bias = jnp.zeros((out_dim,), dtype=jnp.float32)

    out_none = jax.block_until_ready(
        equal_linear(x, weight, bias, lr_mul=lr_mul, activation=None))
    ref_none = equal_linear_ref(x, weight, bias, lr_mul=lr_mul, activation=None)
    assert jnp.allclose(out_none, ref_none, atol=1e-4, rtol=1e-4)

    out_act = jax.block_until_ready(
        equal_linear(x, weight, bias, lr_mul=lr_mul, activation="fused_lrelu"))
    ref_act = equal_linear_ref(x, weight, bias, lr_mul=lr_mul,
                               activation="fused_lrelu")
    assert jnp.allclose(out_act, ref_act, atol=1e-4, rtol=1e-4)

    # --- 2) Non-aligned dims: padding / slicing path -------------------------
    b2, i2, o2 = 5, 40, 96
    x2 = jax.random.normal(k3, (b2, i2), dtype=jnp.float32)
    w2 = jax.random.normal(k4, (o2, i2), dtype=jnp.float32)
    bias2 = jnp.full((o2,), 0.1, dtype=jnp.float32)
    out2 = jax.block_until_ready(
        equal_linear(x2, w2, bias2, lr_mul=1.0, activation="fused_lrelu"))
    ref2 = equal_linear_ref(x2, w2, bias2, lr_mul=1.0, activation="fused_lrelu")
    assert out2.shape == (b2, o2)
    assert jnp.allclose(out2, ref2, atol=1e-4, rtol=1e-4)

    # --- 3) Forced multi-K path (small tk) to exercise the accumulator ------
    b3, i3, o3 = 16, 256, 256
    x3 = jax.random.normal(k5, (b3, i3), dtype=jnp.float32)
    w3 = jax.random.normal(k6, (o3, i3), dtype=jnp.float32)
    bias3 = jnp.full((o3,), 0.05, dtype=jnp.float32)
    out3 = jax.block_until_ready(
        equal_linear(x3, w3, bias3, lr_mul=1.0, activation=None, tk_max=128))
    ref3 = equal_linear_ref(x3, w3, bias3, lr_mul=1.0, activation=None)
    assert jnp.allclose(out3, ref3, atol=1e-3, rtol=1e-3)

    # --- 4) bf16 MXU feed (f32 accumulation), looser tolerance vs f32 ref ---
    b4, i4, o4 = 8, 512, 512
    x4 = jax.random.normal(k7, (b4, i4), dtype=jnp.float32)
    w4 = jax.random.normal(k8, (o4, i4), dtype=jnp.float32)
    bias4 = jnp.full((o4,), 0.1, dtype=jnp.float32)
    params4 = prepare_equal_linear_params(
        w4, bias4, lr_mul=1.0, activation="fused_lrelu",
        param_dtype=jnp.bfloat16)
    out4 = jax.block_until_ready(equal_linear_apply(x4, params4))
    ref4 = equal_linear_ref(x4, w4, bias4, lr_mul=1.0, activation="fused_lrelu")
    assert out4.shape == (b4, o4)
    assert jnp.allclose(out4, ref4, atol=5e-2, rtol=5e-2)

    print("KERNEL_OK")
</pallas_src>

<mosaic_0001>
module attributes {stable_mosaic.version = 11 : i64} {
  func.func @_equal_linear_kernel_single_k(%arg0: i32, %arg1: i32, %arg2: memref<8x128xf32, #tpu.memory_space<vmem>>, %arg3: memref<128x128xf32, #tpu.memory_space<vmem>>, %arg4: memref<1x128xf32, #tpu.memory_space<vmem>>, %arg5: memref<8x128xf32, #tpu.memory_space<vmem>>) attributes {dimension_semantics = [#tpu.dimension_semantics<parallel>, #tpu.dimension_semantics<parallel>], iteration_bounds = array<i64: 1, 1>, scalar_prefetch = 0 : i64, scratch_operands = 0 : i64, tpu.core_type = #tpu.core_type<tc>, window_params = [{transform_indices = @transform_0, window_bounds = array<i64: 8, 128>}, {transform_indices = @transform_1, window_bounds = array<i64: 128, 128>}, {transform_indices = @transform_2, window_bounds = array<i64: 1, 128>}, {transform_indices = @transform_3, window_bounds = array<i64: 8, 128>}]} {
    %c0 = arith.constant 0 : index
    %c0_0 = arith.constant 0 : index
    %0 = vector.load %arg2[%c0, %c0_0] : memref<8x128xf32, #tpu.memory_space<vmem>>, vector<8x128xf32>
    %c0_1 = arith.constant 0 : index
    %c0_2 = arith.constant 0 : index
    %1 = vector.load %arg3[%c0_1, %c0_2] : memref<128x128xf32, #tpu.memory_space<vmem>>, vector<128x128xf32>
    %cst = arith.constant dense<0.000000e+00> : vector<8x128xf32>
    %2 = tpu.matmul %0, %1, %cst {dimension_numbers = #tpu.dot_dimension_numbers<[1], [0], [0], [1], [0, 0, 1, 1], [], []>} : vector<8x128xf32>, vector<128x128xf32>, vector<8x128xf32> -> vector<8x128xf32>
    %cst_3 = arith.constant 0.00176776689 : f32
    %3 = vector.broadcast %cst_3 : f32 to vector<8x128xf32>
    %4 = arith.mulf %2, %3 : vector<8x128xf32>
    %c0_4 = arith.constant 0 : index
    %c0_5 = arith.constant 0 : index
    %5 = vector.load %arg4[%c0_4, %c0_5] : memref<1x128xf32, #tpu.memory_space<vmem>>, vector<1x128xf32>
    %6 = vector.broadcast %5 : vector<1x128xf32> to vector<8x128xf32>
    %7 = arith.addf %4, %6 : vector<8x128xf32>
    %c0_6 = arith.constant 0 : index
    %c0_7 = arith.constant 0 : index
    %8 = vector.load %arg5[%c0_6, %c0_7] : memref<8x128xf32, #tpu.memory_space<vmem>>, vector<8x128xf32>
    tpu.vector_store %arg5[%c0_6, %c0_7], %7 {strides = array<i32>} : memref<8x128xf32, #tpu.memory_space<vmem>>, vector<8x128xf32>,
    return
  }
  func.func @transform_0(%arg0: i32, %arg1: i32) -> (i32, i32) {
    %c0_i32 = arith.constant 0 : i32
    %c0_i32_0 = arith.constant 0 : i32
    return %arg0, %c0_i32 : i32, i32
  }
  func.func @transform_1(%arg0: i32, %arg1: i32) -> (i32, i32) {
    %c0_i32 = arith.constant 0 : i32
    %c0_i32_0 = arith.constant 0 : i32
    return %c0_i32, %arg1 : i32, i32
  }
  func.func @transform_2(%arg0: i32, %arg1: i32) -> (i32, i32) {
    %c0_i32 = arith.constant 0 : i32
    %c0_i32_0 = arith.constant 0 : i32
    return %c0_i32, %arg1 : i32, i32
  }
  func.func @transform_3(%arg0: i32, %arg1: i32) -> (i32, i32) {
    %c0_i32 = arith.constant 0 : i32
    return %arg0, %arg1 : i32, i32
  }
}

</mosaic_0001>

<bundles_post_ra>
// kernel: tpu_custom_call.1
= control target key start
LH: loop header
LB: loop body
LE: loop exit
PB: predicated region body
PF: predicated region fallthrough
CT: control target
= control target key end

     0   :  { %8 = vsyncpa [#allocation3], 0  ;;  %s319_s0 = inlined_call_operand.hbm [shape: f32[8,128], index: 0, kind: input, shape index: {}]   ;;  %s320_s1 = inlined_call_operand.hbm [shape: f32[128,128], index: 1, kind: input, shape index: {}]   ;;  %s321_s2 = inlined_call_operand.vmem [shape: f32[1,128], index: 2, kind: input, shape index: {}]   ;;  %s322_s3 = inlined_call_operand.hbm [shape: f32[8,128], index: 3, kind: output, shape index: {}]  }
   0x1   :  { %9 = vsyncpa [#allocation6], 0 }
   0x2   :  { %10 = vsyncpa [#allocation4], 0  ;;  %s280_s12 = smov [#allocation2]   ;;  %s281_s14 = smov [#allocation5]  }
   0x3   :  { %s17_s13 = sshll.u32 %s280_s12, 4  ;;  %s26_s15 = sshll.u32 %s281_s14, 4  ;;  %s18_s13 = int_to_ptr.vmem [resolvable:$true] %s17_s13  ;;  %s27_s15 = int_to_ptr.vmem [resolvable:$true] %s26_s15 }
   0x4   :  { %s222_s16 = scalar_lea.vmem %s18_s13, 128  ;;  %p227_p1 = scmp.lt.s32.totalorder %s18_s13, %s18_s13 }
   0x5   :  { %p223_p0 = scmp.ne.s32.totalorder %s18_s13, %s222_s16  ;;  %p228_p2 = scmp.lt.s32.totalorder %s222_s16, %s222_s16 }
   0x7   :  { %p229_p3 = por %p228_p2, %p227_p1 }
   0x9   :  { %p230_p4 = pnand %p229_p3, %p223_p0 }
   0xb   :  { %233 = shalt.err (!%p230_p4)
}
   0xc   :  { %20 = dma.hbm_to_vmem [thread:$0]  %s319_s0, 128, %s18_s13, [#allocation3]  }
   0xd   :  { %s242_s19 = scalar_lea.vmem %s27_s15, 2048  ;;  %p247_p6 = scmp.lt.s32.totalorder %s27_s15, %s27_s15 }
   0xe   :  { %p243_p5 = scmp.ne.s32.totalorder %s27_s15, %s242_s19  ;;  %p248_p7 = scmp.lt.s32.totalorder %s242_s19, %s242_s19 }
  0x10   :  { %p249_p8 = por %p248_p7, %p247_p6 }
  0x12   :  { %p250_p9 = pnand %p249_p8, %p243_p5 }
  0x14   :  { %253 = shalt.err (!%p250_p9)
}
  0x15   :  { %s282_s20 = smov 128   ;;  %s283_s21 = smov 8  }
  0x16   :  { %32 = dma.hbm_to_vmem [thread:$0]  %s320_s1, 2048, %s27_s15, [#allocation6], %s282_s20, %s282_s20, %s283_s21  }
  0x17   :  { %274 = dma.done.wait [#allocation3], 128  }
  0x18   :  { %275 = vsyncadd [#allocation3], 4294967168 }
  0x19   :  { %276 = dma.done.wait [#allocation6], 2048  }
  0x1a   :  { %277 = vsyncadd [#allocation6], 4294965248  ;;  %v284_v0 = vmov 0.0   ;;  %vm285_vm0 = vmmov 0   ;;  %v57_v1 = vld [vmem:[#allocation5 + $0x78] sm:$0xff]  ;;  %v56_v2 = vld [vmem:[#allocation5 + $0x70] sm:$0xff] }
  0x1b   :  { %172 = vmatprep.subr.mxu0 %v284_v0  ;;  %204 = vmatprep.mubr.msk.f32.mxu0 %vm285_vm0, %v284_v0  ;;  %v55_v3 = vld [vmem:[#allocation5 + $0x68] sm:$0xff]  ;;  %v54_v4 = vld [vmem:[#allocation5 + $0x60] sm:$0xff]  ;;  %v53_v5 = vld [vmem:[#allocation5 + $0x58] sm:$0xff]  ;;  %s286_s24 = smov [#allocation7]  }
  0x1c   :  { %173 = vmatpush3.msra.mxu0 %v57_v1  ;;  %v52_v6 = vld [vmem:[#allocation5 + $0x50] sm:$0xff]  ;;  %v51_v7 = vld [vmem:[#allocation5 + $0x48] sm:$0xff]  ;;  %v50_v8 = vld [vmem:[#allocation5 + $0x40] sm:$0xff]  ;;  %s144_s25 = sshll.u32 %s286_s24, 4  ;;  %s145_s25 = int_to_ptr.vmem [resolvable:$true] %s144_s25 }
  0x1d   :  { %174 = vmatprep.subr.mxu0 %v284_v0  ;;  %v49_v9 = vld [vmem:[#allocation5 + $0x38] sm:$0xff]  ;;  %v48_v10 = vld [vmem:[#allocation5 + $0x30] sm:$0xff]  ;;  %v47_v11 = vld [vmem:[#allocation5 + $0x28] sm:$0xff]  ;;  %s254_s26 = scalar_lea.vmem %s145_s25, 128  ;;  %p259_p11 = scmp.lt.s32.totalorder %s145_s25, %s145_s25 }
  0x1e   :  { %175 = vmatpush3.msra.mxu0 %v56_v2  ;;  %v46_v12 = vld [vmem:[#allocation5 + $0x20] sm:$0xff]  ;;  %v45_v13 = vld [vmem:[#allocation5 + $0x18] sm:$0xff]  ;;  %v44_v14 = vld [vmem:[#allocation5 + $0x10] sm:$0xff]  ;;  %p255_p10 = scmp.ne.s32.totalorder %s145_s25, %s254_s26  ;;  %p260_p12 = scmp.lt.s32.totalorder %s254_s26, %s254_s26 }
  0x1f   :  { %176 = vmatprep.subr.mxu0 %v284_v0  ;;  %v43_v15 = vld [vmem:[#allocation5 + $0x8] sm:$0xff]  ;;  %v42_v16 = vld [vmem:[#allocation5] sm:$0xff]  ;;  %v41_v17 = vld [vmem:[#allocation2] sm:$0xff] }
  0x20   :  { %177 = vmatpush3.msra.mxu0 %v55_v3  ;;  %v154_v19 = vld [vmem:[%s321_s2] ss:$0 sm:$0xff]  ;;  %p261_p13 = por %p260_p12, %p259_p11 }
  0x21   :  { %178 = vmatprep.subr.mxu0 %v284_v0 }
  0x22   :  { %179 = vmatpush3.msra.mxu0 %v54_v4  ;;  %p262_p0 = pnand %p261_p13, %p255_p10 }
  0x23   :  { %180 = vmatprep.subr.mxu0 %v284_v0 }
  0x24   :  { %181 = vmatpush3.msra.mxu0 %v53_v5 }
  0x25   :  { %182 = vmatprep.subr.mxu0 %v284_v0 }
  0x26   :  { %183 = vmatpush3.msra.mxu0 %v52_v6 }
  0x27   :  { %184 = vmatprep.subr.mxu0 %v284_v0 }
  0x28   :  { %185 = vmatpush3.msra.mxu0 %v51_v7 }
  0x29   :  { %186 = vmatprep.subr.mxu0 %v284_v0 }
  0x2a   :  { %187 = vmatpush3.msra.mxu0 %v50_v8 }
  0x2b   :  { %188 = vmatprep.subr.mxu0 %v284_v0 }
  0x2c   :  { %189 = vmatpush3.msra.mxu0 %v49_v9 }
  0x2d   :  { %190 = vmatprep.subr.mxu0 %v284_v0 }
  0x2e   :  { %191 = vmatpush3.msra.mxu0 %v48_v10 }
  0x2f   :  { %192 = vmatprep.subr.mxu0 %v284_v0 }
  0x30   :  { %193 = vmatpush3.msra.mxu0 %v47_v11 }
  0x31   :  { %194 = vmatprep.subr.mxu0 %v284_v0 }
  0x32   :  { %195 = vmatpush3.msra.mxu0 %v46_v12 }
  0x33   :  { %196 = vmatprep.subr.mxu0 %v284_v0 }
  0x34   :  { %197 = vmatpush3.msra.mxu0 %v45_v13 }
  0x35   :  { %198 = vmatprep.subr.mxu0 %v284_v0 }
  0x36   :  { %199 = vmatpush3.msra.mxu0 %v44_v14 }
  0x37   :  { %200 = vmatprep.subr.mxu0 %v284_v0 }
  0x38   :  { %201 = vmatpush3.msra.mxu0 %v43_v15 }
  0x39   :  { %202 = vmatprep.subr.mxu0 %v284_v0 }
  0x3a   :  { %203 = vmatpush3.msra.mxu0 %v42_v16 }
  0x3b   :  { %205 = vmatmul.mubr.f32.vlgmr.msra.gmra.mxu0 %v41_v17 }
  0xfb   :  { %v124_v18 = vpop.f32.mrf.mxu0 }
  0xfc   :  { %v128_v20 = vmul.f32 0.0017677669, %v124_v18 }
  0xfd   :  { %v206_v21 = vpop.f32.mrf.mxu0 }
  0xfe   :  { %v136_v22 = vadd.f32 %v154_v19, %v128_v20 }
 0x100   :  { %137 = vst [vmem:[#allocation7] sm:$0xff] %v136_v22 }
 0x101   :  { %265 = shalt.err (!%p262_p0)
}
 0x102   :  { %147 = dma.vmem_to_hbm [thread:$0]  %s145_s25, 128, %s322_s3, [#allocation4]  }
 0x103   :  { %278 = dma.done.wait [#allocation4], 128  }
 0x104   :  { %279 = vsyncadd [#allocation4], 4294967168 }
 0x105   :  { %151 = vsyncpa [#allocation3], 1 }
 0x106   :  { %152 = vsyncpa [#allocation6], 1 }
 0x107   :  { %153 = vsyncpa [#allocation4], 1 }

</bundles_post_ra>
